<compile_context>
chip_gen: v5e
topology: v5e:2x2
jax: 0.10.0
libtpu: 0.0.40
codegen_flags: <defaults>
</compile_context>

<pallas_src>
import functools
import math

import jax
import jax.numpy as jnp
from jax import lax
from jax.experimental import pallas as pl
from jax.experimental.pallas import tpu as pltpu


def _gcn_kernel(feat_ref, graph_ref, w_ref, b_ref, ln_w_ref, ln_b_ref, out_ref,
                *, layer_norm, residual, eps):
    feat = feat_ref[...]          # (G, N, Fin)
    g = graph_ref[...]            # (G, N, N)
    w = w_ref[...]                # (Fout, Fin)  -- PyTorch nn.Linear layout
    b = b_ref[...]                # (1, Fout)

    # Neighborhood aggregation: graph @ feature  (batched over the G group).
    agg = jnp.einsum('gnm,gmf->gnf', g, feat,
                     preferred_element_type=jnp.float32)
    # Linear layer: agg @ W^T + b, contracting the feature dims directly
    # (no transpose of W materialized).
    out = jnp.einsum('gnf,of->gno', agg, w,
                     preferred_element_type=jnp.float32)
    out = out + b[None]           # (1,1,Fout) broadcast

    if layer_norm:
        ln_w = ln_w_ref[...]      # (1, Fout)
        ln_b = ln_b_ref[...]      # (1, Fout)
        mean = jnp.mean(out, axis=-1, keepdims=True)
        centered = out - mean
        var = jnp.mean(centered * centered, axis=-1, keepdims=True)
        out = centered * lax.rsqrt(var + eps)          # rsqrt -> EUP slot
        out = out * ln_w[None] + ln_b[None]

    out = jnp.maximum(out, 0.0)   # ReLU

    if residual:
        out = out + feat.astype(jnp.float32)

    out_ref[...] = out.astype(out_ref.dtype)


def gcn_layer(feature, graph, w, b, ln_w=None, ln_b=None, *,
              layer_norm=False, residual=False, eps=1e-5):
    """Pallas implementation of GCNLayer.forward.

    feature: [B, N, in_dim], graph: [B, N, N]
    w: [out_dim, in_dim], b: [out_dim]
    ln_w / ln_b: [out_dim] (only used when layer_norm=True)
    Returns: [B, N, out_dim]
    """
    B, N, Fin = feature.shape
    assert graph.shape == (B, N, N)
    Fout, Fin_w = w.shape
    assert Fin_w == Fin
    if residual:
        assert Fin == Fout, "residual requires in_dim == out_dim"

    # Group G batches per grid step; keep >= 2 grid steps so v7x megacore
    # can split the work across its two TensorCores.
    if B >= 2 and B % 2 == 0:
        G = B // 2
    else:
        G = 1
    grid = (B // G,)

    # 2-D parameter slabs (SMEM-unfriendly 1-D vectors become (1, Fout) VMEM tiles).
    b2 = b.reshape(1, Fout)
    if ln_w is None:
        ln_w = jnp.ones((Fout,), dtype=feature.dtype)
    if ln_b is None:
        ln_b = jnp.zeros((Fout,), dtype=feature.dtype)
    ln_w2 = ln_w.reshape(1, Fout)
    ln_b2 = ln_b.reshape(1, Fout)

    in_specs = [
        pl.BlockSpec((G, N, Fin), lambda i: (i, 0, 0)),     # feature
        pl.BlockSpec((G, N, N),   lambda i: (i, 0, 0)),     # graph
        pl.BlockSpec((Fout, Fin), lambda i: (0, 0)),        # W (shared)
        pl.BlockSpec((1, Fout),   lambda i: (0, 0)),        # bias (shared)
        pl.BlockSpec((1, Fout),   lambda i: (0, 0)),        # ln weight (shared)
        pl.BlockSpec((1, Fout),   lambda i: (0, 0)),        # ln bias (shared)
    ]
    out_spec = pl.BlockSpec((G, N, Fout), lambda i: (i, 0, 0))

    kern = functools.partial(_gcn_kernel, layer_norm=layer_norm,
                             residual=residual, eps=eps)

    return pl.pallas_call(
        kern,
        out_shape=jax.ShapeDtypeStruct((B, N, Fout), feature.dtype),
        grid_spec=pltpu.PrefetchScalarGridSpec(
            num_scalar_prefetch=0,
            grid=grid,
            in_specs=in_specs,
            out_specs=out_spec,
        ),
        compiler_params=pltpu.CompilerParams(
            dimension_semantics=("parallel",)),
    )(feature, graph, w, b2, ln_w2, ln_b2)


def _reference(feature, graph, w, b, ln_w, ln_b, *, layer_norm, residual, eps=1e-5):
    # Pure-JAX mirror of the PyTorch forward.
    agg = jnp.einsum('bnm,bmf->bnf', graph, feature)
    out = jnp.einsum('bnf,of->bno', agg, w) + b
    if layer_norm:
        mean = jnp.mean(out, axis=-1, keepdims=True)
        var = jnp.mean((out - mean) ** 2, axis=-1, keepdims=True)
        out = (out - mean) / jnp.sqrt(var + eps) * ln_w + ln_b
    out = jnp.maximum(out, 0.0)
    if residual:
        out = out + feature
    return out


if __name__ == "__main__":
    B, N, Din, Dout = 4, 16, 32, 32   # residual=True requires Din == Dout
    layer_norm = True
    residual = True

    key = jax.random.PRNGKey(0)
    kf, kg, kw, kb = jax.random.split(key, 4)
    feature = jax.random.normal(kf, (B, N, Din), dtype=jnp.float32)
    # Row-normalized random "adjacency" so values stay well-scaled.
    graph_raw = jax.random.uniform(kg, (B, N, N), dtype=jnp.float32)
    graph = graph_raw / jnp.sum(graph_raw, axis=-1, keepdims=True)

    # Xavier-uniform-ish init (gain for relu), zero bias — matches initialize().
    gain = math.sqrt(2.0)
    bound = gain * math.sqrt(6.0 / (Din + Dout))
    w = jax.random.uniform(kw, (Dout, Din), dtype=jnp.float32,
                           minval=-bound, maxval=bound)
    b = jnp.zeros((Dout,), dtype=jnp.float32)
    ln_w = jnp.ones((Dout,), dtype=jnp.float32)
    ln_b = jnp.zeros((Dout,), dtype=jnp.float32)

    out = gcn_layer(feature, graph, w, b, ln_w, ln_b,
                    layer_norm=layer_norm, residual=residual)
    jax.block_until_ready(out)

    ref = _reference(feature, graph, w, b, ln_w, ln_b,
                     layer_norm=layer_norm, residual=residual)
    assert out.shape == (B, N, Dout)
    assert jnp.allclose(out, ref, atol=1e-4, rtol=1e-4), (
        float(jnp.max(jnp.abs(out - ref))))

    # Also exercise the plain (no LN, no residual) path.
    out2 = gcn_layer(feature, graph, w, b, layer_norm=False, residual=False)
    jax.block_until_ready(out2)
    ref2 = _reference(feature, graph, w, b, ln_w, ln_b,
                      layer_norm=False, residual=False)
    assert jnp.allclose(out2, ref2, atol=1e-4, rtol=1e-4)

    print("KERNEL_OK")
</pallas_src>

<mosaic_0001>
module attributes {stable_mosaic.version = 11 : i64} {
  func.func @_gcn_kernel(%arg0: i32, %arg1: memref<2x16x32xf32, #tpu.memory_space<vmem>>, %arg2: memref<2x16x16xf32, #tpu.memory_space<vmem>>, %arg3: memref<32x32xf32, #tpu.memory_space<vmem>>, %arg4: memref<1x32xf32, #tpu.memory_space<vmem>>, %arg5: memref<1x32xf32, #tpu.memory_space<vmem>>, %arg6: memref<1x32xf32, #tpu.memory_space<vmem>>, %arg7: memref<2x16x32xf32, #tpu.memory_space<vmem>>) attributes {dimension_semantics = [#tpu.dimension_semantics<parallel>], iteration_bounds = array<i64: 2>, scalar_prefetch = 0 : i64, scratch_operands = 0 : i64, tpu.core_type = #tpu.core_type<tc>, window_params = [{transform_indices = @transform_0, window_bounds = array<i64: 2, 16, 32>}, {transform_indices = @transform_1, window_bounds = array<i64: 2, 16, 16>}, {pipeline_mode = #tpu.pipeline_mode<synchronous>, transform_indices = @transform_2, window_bounds = array<i64: 32, 32>}, {pipeline_mode = #tpu.pipeline_mode<synchronous>, transform_indices = @transform_3, window_bounds = array<i64: 1, 32>}, {pipeline_mode = #tpu.pipeline_mode<synchronous>, transform_indices = @transform_4, window_bounds = array<i64: 1, 32>}, {pipeline_mode = #tpu.pipeline_mode<synchronous>, transform_indices = @transform_5, window_bounds = array<i64: 1, 32>}, {transform_indices = @transform_6, window_bounds = array<i64: 2, 16, 32>}]} {
    %c0 = arith.constant 0 : index
    %c0_0 = arith.constant 0 : index
    %c0_1 = arith.constant 0 : index
    %0 = vector.load %arg1[%c0, %c0_0, %c0_1] : memref<2x16x32xf32, #tpu.memory_space<vmem>>, vector<2x16x32xf32>
    %c0_2 = arith.constant 0 : index
    %c0_3 = arith.constant 0 : index
    %c0_4 = arith.constant 0 : index
    %1 = vector.load %arg2[%c0_2, %c0_3, %c0_4] : memref<2x16x16xf32, #tpu.memory_space<vmem>>, vector<2x16x16xf32>
    %c0_5 = arith.constant 0 : index
    %c0_6 = arith.constant 0 : index
    %2 = vector.load %arg3[%c0_5, %c0_6] : memref<32x32xf32, #tpu.memory_space<vmem>>, vector<32x32xf32>
    %c0_7 = arith.constant 0 : index
    %c0_8 = arith.constant 0 : index
    %3 = vector.load %arg4[%c0_7, %c0_8] : memref<1x32xf32, #tpu.memory_space<vmem>>, vector<1x32xf32>
    "tpu.trace_start"() <{level = 10 : i32, message = "gnm,gmf->gnf"}> : () -> ()
    %cst = arith.constant dense<0.000000e+00> : vector<2x16x32xf32>
    %4 = tpu.matmul %1, %0, %cst {dimension_numbers = #tpu.dot_dimension_numbers<[2], [1], [1], [2], [0, 0, 0, 1, 1, 2], [0], [0]>} : vector<2x16x16xf32>, vector<2x16x32xf32>, vector<2x16x32xf32> -> vector<2x16x32xf32>
    "tpu.trace_stop"() : () -> ()
    "tpu.trace_start"() <{level = 10 : i32, message = "gnf,of->gno"}> : () -> ()
    %cst_9 = arith.constant dense<0.000000e+00> : vector<2x16x32xf32>
    %5 = tpu.matmul %4, %2, %cst_9 {dimension_numbers = #tpu.dot_dimension_numbers<[2], [1], [0, 1], [0], [0, 0, 0, 1, 1, 0], [], []>} : vector<2x16x32xf32>, vector<32x32xf32>, vector<2x16x32xf32> -> vector<2x16x32xf32>
    "tpu.trace_stop"() : () -> ()
    %6 = vector.shape_cast %3 : vector<1x32xf32> to vector<1x1x32xf32>
    %7 = vector.broadcast %6 : vector<1x1x32xf32> to vector<2x16x32xf32>
    %8 = arith.addf %5, %7 : vector<2x16x32xf32>
    %c0_10 = arith.constant 0 : index
    %c0_11 = arith.constant 0 : index
    %9 = vector.load %arg5[%c0_10, %c0_11] : memref<1x32xf32, #tpu.memory_space<vmem>>, vector<1x32xf32>
    %c0_12 = arith.constant 0 : index
    %c0_13 = arith.constant 0 : index
    %10 = vector.load %arg6[%c0_12, %c0_13] : memref<1x32xf32, #tpu.memory_space<vmem>>, vector<1x32xf32>
    %cst_14 = arith.constant dense<0.000000e+00> : vector<2x16xf32>
    %11 = vector.multi_reduction <add>, %8, %cst_14 [2] : vector<2x16x32xf32> to vector<2x16xf32>
    %12 = vector.shape_cast %11 : vector<2x16xf32> to vector<2x16x1xf32>
    %cst_15 = arith.constant 3.200000e+01 : f32
    %13 = vector.broadcast %cst_15 : f32 to vector<2x16x1xf32>
    %14 = arith.divf %12, %13 : vector<2x16x1xf32>
    %15 = vector.broadcast %14 : vector<2x16x1xf32> to vector<2x16x32xf32>
    %16 = arith.subf %8, %15 : vector<2x16x32xf32>
    %17 = arith.mulf %16, %16 : vector<2x16x32xf32>
    %cst_16 = arith.constant dense<0.000000e+00> : vector<2x16xf32>
    %18 = vector.multi_reduction <add>, %17, %cst_16 [2] : vector<2x16x32xf32> to vector<2x16xf32>
    %19 = vector.shape_cast %18 : vector<2x16xf32> to vector<2x16x1xf32>
    %cst_17 = arith.constant 3.200000e+01 : f32
    %20 = vector.broadcast %cst_17 : f32 to vector<2x16x1xf32>
    %21 = arith.divf %19, %20 : vector<2x16x1xf32>
    %cst_18 = arith.constant 9.99999974E-6 : f32
    %22 = vector.broadcast %cst_18 : f32 to vector<2x16x1xf32>
    %23 = arith.addf %21, %22 : vector<2x16x1xf32>
    %24 = math.rsqrt %23 : vector<2x16x1xf32>
    %25 = vector.broadcast %24 : vector<2x16x1xf32> to vector<2x16x32xf32>
    %26 = arith.mulf %16, %25 : vector<2x16x32xf32>
    %27 = vector.shape_cast %9 : vector<1x32xf32> to vector<1x1x32xf32>
    %28 = vector.broadcast %27 : vector<1x1x32xf32> to vector<2x16x32xf32>
    %29 = arith.mulf %26, %28 : vector<2x16x32xf32>
    %30 = vector.shape_cast %10 : vector<1x32xf32> to vector<1x1x32xf32>
    %31 = vector.broadcast %30 : vector<1x1x32xf32> to vector<2x16x32xf32>
    %32 = arith.addf %29, %31 : vector<2x16x32xf32>
    %cst_19 = arith.constant 0.000000e+00 : f32
    %33 = vector.broadcast %cst_19 : f32 to vector<2x16x32xf32>
    %34 = arith.maximumf %32, %33 : vector<2x16x32xf32>
    %35 = arith.addf %34, %0 : vector<2x16x32xf32>
    %c0_20 = arith.constant 0 : index
    %c0_21 = arith.constant 0 : index
    %c0_22 = arith.constant 0 : index
    %36 = vector.load %arg7[%c0_20, %c0_21, %c0_22] : memref<2x16x32xf32, #tpu.memory_space<vmem>>, vector<2x16x32xf32>
    tpu.vector_store %arg7[%c0_20, %c0_21, %c0_22], %35 {strides = array<i32>} : memref<2x16x32xf32, #tpu.memory_space<vmem>>, vector<2x16x32xf32>,
    return
  }
  func.func @transform_0(%arg0: i32) -> (i32, i32, i32) {
    %c0_i32 = arith.constant 0 : i32
    %c0_i32_0 = arith.constant 0 : i32
    %c0_i32_1 = arith.constant 0 : i32
    return %arg0, %c0_i32, %c0_i32_0 : i32, i32, i32
  }
  func.func @transform_1(%arg0: i32) -> (i32, i32, i32) {
    %c0_i32 = arith.constant 0 : i32
    %c0_i32_0 = arith.constant 0 : i32
    %c0_i32_1 = arith.constant 0 : i32
    return %arg0, %c0_i32, %c0_i32_0 : i32, i32, i32
  }
  func.func @transform_2(%arg0: i32) -> (i32, i32) {
    %c0_i32 = arith.constant 0 : i32
    %c0_i32_0 = arith.constant 0 : i32
    %c0_i32_1 = arith.constant 0 : i32
    return %c0_i32, %c0_i32_0 : i32, i32
  }
  func.func @transform_3(%arg0: i32) -> (i32, i32) {
    %c0_i32 = arith.constant 0 : i32
    %c0_i32_0 = arith.constant 0 : i32
    %c0_i32_1 = arith.constant 0 : i32
    return %c0_i32, %c0_i32_0 : i32, i32
  }
  func.func @transform_4(%arg0: i32) -> (i32, i32) {
    %c0_i32 = arith.constant 0 : i32
    %c0_i32_0 = arith.constant 0 : i32
    %c0_i32_1 = arith.constant 0 : i32
    return %c0_i32, %c0_i32_0 : i32, i32
  }
  func.func @transform_5(%arg0: i32) -> (i32, i32) {
    %c0_i32 = arith.constant 0 : i32
    %c0_i32_0 = arith.constant 0 : i32
    %c0_i32_1 = arith.constant 0 : i32
    return %c0_i32, %c0_i32_0 : i32, i32
  }
  func.func @transform_6(%arg0: i32) -> (i32, i32, i32) {
    %c0_i32 = arith.constant 0 : i32
    %c0_i32_0 = arith.constant 0 : i32
    %c0_i32_1 = arith.constant 0 : i32
    return %arg0, %c0_i32, %c0_i32_0 : i32, i32, i32
  }
}

</mosaic_0001>

<bundles_post_ra>
// kernel: tpu_custom_call.1
= control target key start
LH: loop header
LB: loop body
LE: loop exit
PB: predicated region body
PF: predicated region fallthrough
CT: control target
= control target key end

     0   :  { %s1305_s0 = inlined_call_operand.hbm [shape: f32[4,16,32], index: 0, kind: input, shape index: {}]   ;;  %s1306_s1 = inlined_call_operand.hbm [shape: f32[4,16,16], index: 1, kind: input, shape index: {}]   ;;  %s1307_s2 = inlined_call_operand.hbm [shape: f32[32,32], index: 2, kind: input, shape index: {}]   ;;  %s1308_s3 = inlined_call_operand.vmem [shape: f32[1,32], index: 3, kind: input, shape index: {}]   ;;  %s1309_s4 = inlined_call_operand.vmem [shape: f32[1,32], index: 4, kind: input, shape index: {}]   ;;  %s1310_s5 = inlined_call_operand.vmem [shape: f32[1,32], index: 5, kind: input, shape index: {}]   ;;  %s1311_s6 = inlined_call_operand.hbm [shape: f32[4,16,32], index: 6, kind: output, shape index: {}]  }
   0x1   :  { %1317 = sst [smem:[#allocation15_spill]] %s1305_s0 }
   0x2   :  { %1318 = sst [smem:[#allocation16_spill]] %s1307_s2 }
   0x3   :  { %11 = vsyncpa [#allocation3], 0 }
   0x4   :  { %13 = vsyncpa [#allocation3 + $0x1], 0 }
   0x5   :  { %14 = vsyncpa [#allocation6], 0 }
   0x6   :  { %16 = vsyncpa [#allocation6 + $0x1], 0 }
   0x7   :  { %17 = vsyncpa [#allocation4], 0 }
   0x8   :  { %19 = vsyncpa [#allocation4 + $0x1], 0  ;;  %s1049_s21 = smov 0   ;;  %s1051_s22 = smov 0  }
   0x9   :  { %s1053_s23 = smov 0   ;;  %s1055_s24 = smov 0  }
   0xa LB: > { %1319 = sst [smem:[#allocation13_spill]] %s1002_s23  ;;  %s1070_s25 = sadd.s32 4294967295, %s1006_s24   ;;  %s1006_s24 = sphi %s1055_s24, %s1335_s24   ;;  %s1002_s23 = sphi %s1053_s23, %s1332_s23   ;;  %s998_s22 = sphi %s1051_s22, %s1334_s22   ;;  %s994_s21 = sphi %s1049_s21, %s1333_s21  }
   0xb   : > { %s709_s26 = sadd.s32 4294967294, %s1006_s24   ;;  %p45_p0 = scmp.ne.s32.totalorder %s998_s22, %s994_s21 }
   0xc   : > { %p46_p1 = scmp.eq.s32.totalorder %s1070_s25, 0  ;;  %p179_p2 = scmp.eq.s32.totalorder %s1070_s25, 1 }
   0xd   : > { %p185_p3 = scmp.eq.s32.totalorder %s709_s26, 1  ;;  %p710_p5 = scmp.ge.s32.totalorder %s1006_s24, 1 }
   0xe   : > { %p1079_p4 = por %p46_p1, %p45_p0  ;;  %p192_p7 = scmp.lt.s32.totalorder %s1006_s24, 3 }
   0xf   : > { %p1084_p6 = por %p185_p3, %p45_p0  ;;  %s1322_s2 = sld [smem:[#allocation16_spill]] }
  0x10   : > { %p1092_p8 = pnand %p710_p5, %p192_p7  ;;  %s1008_s9 = smov [#allocation7]  }
  0x11   : > { %s205_s10 = sshll.u32 %s1008_s9, 4  ;;  %s1102_s11 = sadd.s32 1, %s1006_s24   ;;  %s206_s10 = int_to_ptr.vmem [resolvable:$true] %s205_s10 }
  0x12   : > { %p772_p9 = pneg %p1092_p8  ;;  %s1312_s12 = smov 128  }
  0x13   : > { %s1314_s13 = smov 8   ;;  %s29_s14 = ssub.s32 %s1006_s24, %s1102_s11 }
  0x14   : > { %p773_p10 = pnand %p772_p9, %p46_p1  ;;  %s32_s15 = sadd.s32 1, %s1002_s23 }
  0x15   : > { %s203_s7 = sshll.u32 %s1322_s2, 4  ;;  %p30_p12 = scmp.eq.s32.totalorder %s29_s14, 0  ;;  %s204_s7 = int_to_ptr.hbm [resolvable:$true] %s203_s7 }
  0x16   : > { %775 = dma.hbm_to_vmem [thread:$0]  (!%p773_p10), %s204_s7, 512, %s206_s10, [#allocation6], %s1312_s12, %s1312_s12, %s1314_s13  }
  0x17   : > { %p39_p13 = scmp.ne.s32.totalorder %s1002_s23, %s998_s22  ;;  %p40_p0 = scmp.eq.s32.totalorder %s1006_s24, 0 }
  0x18   : > { %p788_p3 = scmp.lt.s32.totalorder %s1006_s24, 2  ;;  %s228_s18 = sand.u32 1, %s1002_s23  }
  0x19   : > { %s1115_s16 = scalar_select %p30_p12, %s1002_s23, %s32_s15  }
  0x1a   : > { %p41_p5 = por %p40_p0, %p39_p13  ;;  %p1119_p7 = por %p179_p2, %p39_p13 }
  0x1b   : > { %1324 = sst [smem:[#allocation14_spill]] %s1115_s16  ;;  %s745_s19 = sshll.u32 %s1006_s24, 5 }
  0x1c   : > { %s713_s20 = sshll.u32 %s228_s18, 5  ;;  %s1326_s0 = sld [smem:[#allocation15_spill]] }
  0x1d   : > { %s232_s9 = scalar_lea.vmem [#allocation2], %s713_s20  ;;  %p1130_p9 = pnand %p788_p3, %p41_p5 }
  0x1e   : > { %s241_s10 = sshll.u32 %s232_s9, 4  ;;  %s261_s13 = scalar_lea.hbm %s1306_s1, %s745_s19  ;;  %s242_s10 = int_to_ptr.vmem [resolvable:$true] %s241_s10 }
  0x1f   : > { %s255_s2 = scalar_lea.vmem [#allocation5], %s713_s20  ;;  %s262_s26 = sshll.u32 %s261_s13, 4  ;;  %s263_s26 = int_to_ptr.hbm [resolvable:$true] %s262_s26 }
  0x20   : > { %s1137_s16 = sshll.u32 %s255_s2, 4  ;;  %s229_s29 = scalar_lea.sflag [#allocation3], %s228_s18  ;;  %s265_s16 = int_to_ptr.vmem [resolvable:$true] %s1137_s16 }
  0x21   : > { %p876_p10 = pneg %p1130_p9 }
  0x22   : > { %s238_s30 = scalar_lea.hbm %s1326_s0, %s745_s19  ;;  %s879_s15 = scalar_lea.hbm %s1326_s0, 64 }
  0x23   : > { %s239_s7 = sshll.u32 %s238_s30, 4  ;;  %s240_s7 = int_to_ptr.hbm [resolvable:$true] %s239_s7 }
  0x24   : > { %s872_s30 = sshra.s32 %s240_s7, 4  ;;  %s873_s30 = int_to_ptr.hbm [resolvable:$true] %s872_s30 }
  0x25   : > { %s874_s9 = scalar_lea.hbm %s873_s30, 32  ;;  %p880_p0 = scmp.lt.s32.totalorder %s873_s30, %s1326_s0 }
  0x26   : > { %p875_p2 = scmp.ne.s32.totalorder %s873_s30, %s874_s9  ;;  %p881_p3 = scmp.lt.s32.totalorder %s879_s15, %s874_s9 }
  0x28   : > { %p877_p12 = pnand %p876_p10, %p875_p2  ;;  %p882_p5 = por %p881_p3, %p880_p0 }
  0x2a   : > { %p878_p13 = pneg %p877_p12 }
  0x2c   : > { %p883_p11 = pnand %p882_p5, %p878_p13 }
  0x2e   : > { %886 = shalt.err (!%p883_p11)
}
  0x2f   : > { %s1328_s2 = smov 8   ;;  %s1329_s13 = smov 128  }
  0x30   : > { %779 = dma.hbm_to_vmem [thread:$0]  (!%p1130_p9), %s240_s7, 512, %s242_s10, %s229_s29, %s1329_s13, %s1329_s13, %s1328_s2  }
  0x31   : > { %s251_s23 = sand.u32 1, %s1006_s24   ;;  %s902_s12 = sshra.s32 %s263_s26, 4  ;;  %s903_s12 = int_to_ptr.hbm [resolvable:$true] %s902_s12 }
  0x32   : > { %s252_s18 = scalar_lea.sflag [#allocation6], %s251_s23  ;;  %s904_s30 = scalar_lea.hbm %s903_s12, 32 }
  0x33   : > { %p905_p2 = scmp.ne.s32.totalorder %s903_s12, %s904_s30  ;;  %s909_s19 = scalar_lea.hbm %s1306_s1, 64 }
  0x34   : > { %p910_p13 = scmp.lt.s32.totalorder %s903_s12, %s1306_s1  ;;  %p911_p0 = scmp.lt.s32.totalorder %s909_s19, %s904_s30 }
  0x35   : > { %p907_p11 = pnand %p905_p2, %p876_p10 }
  0x36   : > { %p912_p3 = por %p911_p0, %p910_p13 }
  0x37   : > { %p908_p12 = pneg %p907_p11 }
  0x39   : > { %p913_p5 = pnand %p912_p3, %p908_p12 }
  0x3b   : > { %916 = shalt.err (!%p913_p5)
}
  0x3c   : > { %782 = dma.hbm_to_vmem [thread:$0]  (!%p1130_p9), %s263_s26, 512, %s265_s16, %s252_s18, %s1329_s13, %s1329_s13, %s1328_s2  }
  0x3d   : > { %276 = sbr.rel (%p1092_p8) target bundleno = 620 (0x26c), region = 44  ;;  %s1174_s7 = sand.u32 (!%p1092_p8), 1, %s998_s22  }
  0x3e   : > { %s1177_s0 = sshll.u32 (!%p1092_p8), %s1174_s7, 5  ;;  %s279_s10 = scalar_lea.sflag (!%p1092_p8), [#allocation3], %s1174_s7 }
  0x3f   : > { %s282_s29 = scalar_lea.vmem (!%p1092_p8), [#allocation2], %s1177_s0 }
  0x42   : > { %977 = dma.done.wait (%p1079_p4), %s279_s10, 512  }
  0x43   : > { %979 = vsyncadd (%p1079_p4), %s279_s10, 4294966784  ;;  %s288_s8 = sand.u32 1, %s1070_s25   ;;  %s292_s14 = scalar_lea.vmem [#allocation5], %s1177_s0 }
  0x44   : > { %s289_s16 = scalar_lea.sflag [#allocation6], %s288_s8 }
  0x45   : > { %981 = dma.done.wait (%p1079_p4), %s289_s16, 512  }
  0x46   : > { %983 = vsyncadd (%p1079_p4), %s289_s16, 4294966784 }
  0x47   : > { %985 = dma.done.wait (%p46_p1), [#allocation6], 512  }
  0x48   : > { %987 = vsyncadd (%p46_p1), [#allocation6], 4294966784  ;;  %v1195_v0 = vld [vmem:[%s282_s29 + $0x8] sm:$0xff]  ;;  %v1197_v1 = vld [vmem:[%s282_s29 + $0x18] sm:$0xff]  ;;  %vm348_vm0 = vcmask 130048   ;;  %vm410_vm1 = vcmask 261120  }
  0x49   : > { %v1199_v2 = vld [vmem:[%s282_s29] sm:$0xff]  ;;  %369 = vmatpush.msra.mxu0 %v1195_v0  ;;  %398 = vmatpush.msra.mxu1 %v1197_v1  ;;  %v1203_v3 = vld [vmem:[%s282_s29 + $0x10] sm:$0xff]  ;;  %v346_v6 = vld [vmem:[#allocation7 + $0x18] sm:$0xff]  ;;  %v1011_v29 = vmov 32.0   ;;  %s331_s12 = scalar_lea.vmem [#allocation8], %s1177_s0  ;;  %s749_s30 = sshll.u32 %s1070_s25, 5 }
  0x4a   : > { %v339_v4 = vld [vmem:[%s292_s14] sm:$0xff]  ;;  %v341_v5 = vld [vmem:[%s292_s14 + $0x10] sm:$0xff]  ;;  %751 = vmatpush.xpose.msk.msra.mxu2 %vm410_vm1, %v346_v6  ;;  %752 = vmatpush.xpose.msk.msra.mxu3 %vm410_vm1, %v346_v6  ;;  %v340_v8 = vld [vmem:[%s292_s14 + $0x8] sm:$0xff]  ;;  %832 = vrcp.f32 %v1011_v29  ;;  %s600_s19 = scalar_lea.hbm %s1311_s6, %s749_s30  ;;  %s601_s25 = sshll.u32 %s331_s12, 4  ;;  %s602_s25 = int_to_ptr.vmem [resolvable:$true] %s601_s25 }
  0x4b   : > { %370 = vmatpush.msra.mxu0 %v1199_v2  ;;  %399 = vmatpush.msra.mxu1 %v1203_v3  ;;  %v345_v7 = vld [vmem:[#allocation7 + $0x10] sm:$0xff]  ;;  %v342_v9 = vld [vmem:[%s292_s14 + $0x18] sm:$0xff]  ;;  %v344_v10 = vld [vmem:[#allocation7 + $0x8] sm:$0xff]  ;;  %s603_s20 = sshll.u32 %s600_s19, 4  ;;  %s588_s0 = scalar_lea.sflag [#allocation4], %s1174_s7  ;;  %s604_s20 = int_to_ptr.hbm [resolvable:$true] %s603_s20 }
  0x4c   : > { %726 = vmatmul.msk.f32.vlgmr.msra.gmra.mxu0 %vm348_vm0, %v339_v4  ;;  %728 = vmatmul.msk.f32.vlgmr.msra.gmra.mxu1 %vm348_vm0, %v341_v5  ;;  %v343_v11 = vld [vmem:[#allocation7] sm:$0xff]  ;;  %s946_s10 = sshra.s32 %s604_s20, 4  ;;  %s952_s14 = scalar_lea.hbm %s1311_s6, 64  ;;  %s947_s10 = int_to_ptr.hbm [resolvable:$true] %s946_s10 }
  0x4d   : > { %730 = vmatpush.xpose.msk.msrb.mxu0 %vm410_vm1, %v346_v6  ;;  %750 = vmatpush.xpose.msk.msrb.mxu1 %vm410_vm1, %v346_v6  ;;  %v829_v16 = vld [vmem:[%s1308_s3] ss:$0 sm:$0xff]  ;;  %s948_s29 = scalar_lea.hbm %s947_s10, 32  ;;  %p953_p9 = scmp.lt.s32.totalorder %s947_s10, %s1311_s6 }
  0x4e   : > { %754 = vmatpush.xpose.msk.msra.mxu2 %vm410_vm1, %v345_v7  ;;  %755 = vmatpush.xpose.msk.msra.mxu3 %vm410_vm1, %v345_v7  ;;  %p949_p1 = scmp.ne.s32.totalorder %s947_s10, %s948_s29  ;;  %p954_p10 = scmp.lt.s32.totalorder %s952_s14, %s948_s29 }
  0x50   : > { %v833_v30 = vpop.eup %832  ;;  %p950_p4 = pnand %p949_p1, %p1119_p7  ;;  %p955_p2 = por %p954_p10, %p953_p9 }
  0x51   : > { %731 = vmatpush.xpose.msk.msrb.mxu0 %vm410_vm1, %v345_v7  ;;  %753 = vmatpush.xpose.msk.msrb.mxu1 %vm410_vm1, %v345_v7  ;;  %v479_v31 = vmul.f32 32.0, %v833_v30  ;;  %vm483_vm2 = vweird.f32 %v833_v30 }
  0x52   : > { %757 = vmatpush.xpose.msk.msra.mxu2 %vm410_vm1, %v344_v10  ;;  %758 = vmatpush.xpose.msk.msra.mxu3 %vm410_vm1, %v344_v10  ;;  %p951_p8 = pneg %p950_p4 }
  0x53   : > { %v480_v32 = vsub.f32 1.0, %v479_v31 }
  0x54   : > { %727 = vmatmul.msk.f32.gmra.mxu0 %vm348_vm0, %v340_v8  ;;  %729 = vmatmul.msk.f32.gmra.mxu1 %vm348_vm0, %v342_v9  ;;  %p956_p11 = pnand %p955_p2, %p951_p8 }
  0x55   : > { %732 = vmatpush.xpose.msk.msrb.mxu0 %vm410_vm1, %v344_v10  ;;  %756 = vmatpush.xpose.msk.msrb.mxu1 %vm410_vm1, %v344_v10  ;;  %v481_v33 = vmul.f32 %v833_v30, %v480_v32 }
  0x56   : > { %760 = vmatpush.xpose.msk.msra.mxu2 %vm410_vm1, %v343_v11  ;;  %761 = vmatpush.xpose.msk.msra.mxu3 %vm410_vm1, %v343_v11 }
  0x57   : > { %v482_v34 = vadd.f32 %v833_v30, %v481_v33 }
  0x59   : > { %733 = vmatpush.xpose.msk.msrb.mxu0 %vm410_vm1, %v343_v11  ;;  %759 = vmatpush.xpose.msk.msrb.mxu1 %vm410_vm1, %v343_v11  ;;  %v484_v35 = vsel %vm483_vm2, %v833_v30, %v482_v34 }
  0xc9   : > { %v372_v12 = vpop.f32.mrf.mxu0  ;;  %v401_v13 = vpop.f32.mrf.mxu1 }
  0xca   : > { %734 = vmatmul.msk.f32.vlgmr.msrb.gmra.mxu0 %vm410_vm1, %v372_v12  ;;  %736 = vmatmul.msk.f32.vlgmr.msra.gmra.mxu2 %vm410_vm1, %v401_v13 }
  0xd1   : > { %v375_v14 = vpop.f32.mrf.mxu0  ;;  %v404_v15 = vpop.f32.mrf.mxu1 }
  0xd2   : > { %735 = vmatmul.msk.f32.vlgmr.msrb.gmra.mxu1 %vm410_vm1, %v375_v14  ;;  %737 = vmatmul.msk.f32.vlgmr.msra.gmra.mxu3 %vm410_vm1, %v404_v15 }
 0x147   : > { %v452_v17 = vpop.f32.mrf.mxu0 }
 0x148   : > { %v453_v18 = vadd.f32 %v829_v16, %v452_v17 }
 0x14a   : > { %v466_v19 = vsel %vm410_vm1, %v453_v18, 0.0 }
 0x14b   : > { %467 = vadd.xlane.f32.xlu0 %v466_v19  ;;  %v830_v19 = vld [vmem:[%s1309_s4] ss:$0 sm:$0xff] }
 0x14d   : > { %v458_v20 = vpop.f32.mrf.mxu2 }
 0x14e   : > { %v459_v21 = vadd.f32 %v829_v16, %v458_v20 }
 0x14f   : > { %v455_v22 = vpop.f32.mrf.mxu1 }
 0x150   : > { %v456_v23 = vadd.f32 %v829_v16, %v455_v22  ;;  %v472_v24 = vsel %vm410_vm1, %v459_v21, 0.0 }
 0x151   : > { %473 = vadd.xlane.f32.xlu1 %v472_v24 }
 0x152   : > { %v469_v25 = vsel %vm410_vm1, %v456_v23, 0.0 }
 0x153   : > { %470 = vadd.xlane.f32.xlu0 %v469_v25 }
 0x155   : > { %v461_v26 = vpop.f32.mrf.mxu3 }
 0x156   : > { %v462_v27 = vadd.f32 %v829_v16, %v461_v26 }
 0x158   : > { %v475_v28 = vsel %vm410_vm1, %v462_v27, 0.0 }
 0x159   : > { %476 = vadd.xlane.f32.xlu1 %v475_v28 }
 0x1be   : > { %v468_v36 = vpop.xlane.xlu0 %467 }
 0x1bf   : > { %v485_v37 = vmul.f32 %v484_v35, %v468_v36 }
 0x1c1   : > { %v489_v38 = vsub.f32 %v453_v18, %v485_v37 }
 0x1c3   : > { %v493_v39 = vmul.f32 %v489_v38, %v489_v38 }
 0x1c4   : > { %v474_v40 = vpop.xlane.xlu1 %473 }
 0x1c5   : > { %v487_v41 = vmul.f32 %v484_v35, %v474_v40  ;;  %v497_v42 = vsel %vm410_vm1, %v493_v39, 0.0 }
 0x1c6   : > { %498 = vadd.xlane.f32.xlu2 %v497_v42  ;;  %v471_v43 = vpop.xlane.xlu0 %470 }
 0x1c7   : > { %v1239_v44 = vsub.f32 %v459_v21, %v487_v41  ;;  %v486_v45 = vmul.f32 %v484_v35, %v471_v43 }
 0x1c9   : > { %v1241_v46 = vsub.f32 %v456_v23, %v486_v45  ;;  %v495_v47 = vmul.f32 %v1239_v44, %v1239_v44  ;;  %v831_v23 = vld [vmem:[%s1310_s5] ss:$0 sm:$0xff] }
 0x1cb   : > { %v503_v48 = vsel %vm410_vm1, %v495_v47, 0.0  ;;  %v494_v49 = vmul.f32 %v1241_v46, %v1241_v46 }
 0x1cc   : > { %v477_v50 = vpop.xlane.xlu1 %476  ;;  %504 = vadd.xlane.f32.xlu0 %v503_v48 }
 0x1cd   : > { %v488_v51 = vmul.f32 %v484_v35, %v477_v50  ;;  %v500_v52 = vsel %vm410_vm1, %v494_v49, 0.0 }
 0x1ce   : > { %501 = vadd.xlane.f32.xlu2 %v500_v52 }
 0x1cf   : > { %v1249_v53 = vsub.f32 %v462_v27, %v488_v51 }
 0x1d1   : > { %v496_v54 = vmul.f32 %v1249_v53, %v1249_v53 }
 0x1d3   : > { %v506_v55 = vsel %vm410_vm1, %v496_v54, 0.0 }
 0x1d4   : > { %507 = vadd.xlane.f32.xlu1 %v506_v55 }
 0x239   : > { %v499_v56 = vpop.xlane.xlu2 %498 }
 0x23a   : > { %v509_v57 = vmul.f32 %v499_v56, %v484_v35 }
 0x23c   : > { %v513_v58 = vadd.f32 1e-05, %v509_v57 }
 0x23e   : > { %834 = vrsqrt.f32 %v513_v58  ;;  %vm523_vm4 = vweird.f32 %v513_v58 }
 0x23f   : > { %v505_v59 = vpop.xlane.xlu0 %504 }
 0x240   : > { %v511_v60 = vmul.f32 %v505_v59, %v484_v35 }
 0x241   : > { %v502_v61 = vpop.xlane.xlu2 %501 }
 0x242   : > { %v515_v62 = vadd.f32 1e-05, %v511_v60  ;;  %v510_v63 = vmul.f32 %v502_v61, %v484_v35 }
 0x244   : > { %v835_v4 = vpop.eup %834  ;;  %836 = vrsqrt.f32 %v515_v62  ;;  %v514_v5 = vadd.f32 1e-05, %v510_v63  ;;  %vm543_vm7 = vweird.f32 %v515_v62 }
 0x245   : > { %v518_v6 = vmul.f32 %v835_v4, %v513_v58  ;;  %vm524_vm3 = vweird.f32 %v835_v4 }
 0x246   : > { %838 = vrsqrt.f32 %v514_v5  ;;  %vm525_vm5 = vmor %vm523_vm4, %vm524_vm3  ;;  %vm533_vm10 = vweird.f32 %v514_v5 }
 0x247   : > { %v519_v7 = vmul.f32 %v835_v4, %v518_v6  ;;  %v508_v8 = vpop.xlane.xlu1 %507 }
 0x248   : > { %v512_v9 = vmul.f32 %v508_v8, %v484_v35 }
 0x249   : > { %v520_v10 = vmul.f32 0.5, %v519_v7 }
 0x24a   : > { %v837_v11 = vpop.eup %836  ;;  %v516_v12 = vadd.f32 1e-05, %v512_v9 }
 0x24b   : > { %v521_v13 = vsub.f32 1.5, %v520_v10  ;;  %v538_v14 = vmul.f32 %v837_v11, %v515_v62  ;;  %vm544_vm6 = vweird.f32 %v837_v11 }
 0x24c   : > { %v839_v15 = vpop.eup %838  ;;  %840 = vrsqrt.f32 %v516_v12  ;;  %vm545_vm9 = vmor %vm543_vm7, %vm544_vm6  ;;  %vm553_vm13 = vweird.f32 %v516_v12 }
 0x24d   : > { %v522_v16 = vmul.f32 %v835_v4, %v521_v13  ;;  %v539_v17 = vmul.f32 %v837_v11, %v538_v14  ;;  %v528_v18 = vmul.f32 %v839_v15, %v514_v5  ;;  %vm534_vm8 = vweird.f32 %v839_v15 }
 0x24e   : > { %vm535_vm11 = vmor %vm533_vm10, %vm534_vm8 }
 0x24f   : > { %v526_v20 = vsel %vm525_vm5, %v835_v4, %v522_v16  ;;  %v540_v21 = vmul.f32 0.5, %v539_v17  ;;  %v529_v22 = vmul.f32 %v839_v15, %v528_v18 }
 0x250   : > { %v557_v24 = vmul.f32 %v526_v20, %v489_v38 }
 0x251   : > { %v541_v25 = vsub.f32 1.5, %v540_v21  ;;  %v530_v26 = vmul.f32 0.5, %v529_v22 }
 0x252   : > { %v841_v27 = vpop.eup %840  ;;  %v564_v28 = vmul.f32 %v830_v19, %v557_v24 }
 0x253   : > { %v542_v29 = vmul.f32 %v837_v11, %v541_v25  ;;  %v531_v30 = vsub.f32 1.5, %v530_v26  ;;  %v548_v31 = vmul.f32 %v841_v27, %v516_v12  ;;  %vm554_vm12 = vweird.f32 %v841_v27 }
 0x254   : > { %v571_v32 = vadd.f32 %v831_v23, %v564_v28  ;;  %vm555_vm14 = vmor %vm553_vm13, %vm554_vm12 }
 0x255   : > { %v546_v33 = vsel %vm545_vm9, %v837_v11, %v542_v29  ;;  %v532_v34 = vmul.f32 %v839_v15, %v531_v30  ;;  %v549_v35 = vmul.f32 %v841_v27, %v548_v31 }
 0x256   : > { %v575_v36 = vmax.f32 %v571_v32, 0.0  ;;  %v559_v37 = vmul.f32 %v546_v33, %v1239_v44 }
 0x257   : > { %v536_v38 = vsel %vm535_vm11, %v839_v15, %v532_v34  ;;  %v550_v39 = vmul.f32 0.5, %v549_v35 }
 0x258   : > { %v579_v40 = vadd.f32 %v575_v36, %v1199_v2  ;;  %v566_v41 = vmul.f32 %v830_v19, %v559_v37  ;;  %v558_v42 = vmul.f32 %v536_v38, %v1241_v46 }
 0x259   : > { %v551_v43 = vsub.f32 1.5, %v550_v39 }
 0x25a   : > { %583 = vst.msk [vmem:[%s331_s12] sm:$0xff] %vm410_vm1, %v579_v40  ;;  %v573_v45 = vadd.f32 %v831_v23, %v566_v41  ;;  %v565_v47 = vmul.f32 %v830_v19, %v558_v42 }
 0x25b   : > { %v552_v48 = vmul.f32 %v841_v27, %v551_v43 }
 0x25c   : > { %v577_v49 = vmax.f32 %v573_v45, 0.0  ;;  %v572_v44 = vadd.f32 %v831_v23, %v565_v47 }
 0x25d   : > { %v556_v50 = vsel %vm555_vm14, %v841_v27, %v552_v48 }
 0x25e   : > { %v581_v51 = vadd.f32 %v577_v49, %v1203_v3  ;;  %v576_v2 = vmax.f32 %v572_v44, 0.0  ;;  %v560_v46 = vmul.f32 %v556_v50, %v1249_v53 }
 0x260   : > { %585 = vst.msk [vmem:[%s331_s12 + $0x10] sm:$0xff] %vm410_vm1, %v581_v51  ;;  %v580_v52 = vadd.f32 %v576_v2, %v1195_v0  ;;  %v567_v54 = vmul.f32 %v830_v19, %v560_v46 }
 0x262   : > { %584 = vst.msk [vmem:[%s331_s12 + $0x8] sm:$0xff] %vm410_vm1, %v580_v52  ;;  %v574_v55 = vadd.f32 %v831_v23, %v567_v54 }
 0x264   : > { %v578_v3 = vmax.f32 %v574_v55, 0.0 }
 0x266   : > { %v582_v53 = vadd.f32 %v578_v3, %v1197_v1 }
 0x268   : > { %586 = vst.msk [vmem:[%s331_s12 + $0x18] sm:$0xff] %vm410_vm1, %v582_v53 }
 0x269   : > { %959 = shalt.err (!%p956_p11)
}
 0x26a   : > { %s1012_s7 = smov 128   ;;  %s1013_s2 = smov 8  }
 0x26b   : > { %770 = dma.vmem_to_hbm [thread:$0]  (%p1119_p7), %s602_s25, 512, %s604_s20, %s588_s0, %s1012_s7, %s1012_s7, %s1013_s2  }
 0x26c PF: > { %s618_s13 = sand.u32 1, %s994_s21   ;;  %p1330_p12 = scmp.ge.s32.totalorder %s1006_s24, 2 }
 0x26d   : > { %s619_s23 = scalar_lea.sflag [#allocation4], %s618_s13 }
 0x26e   : > { %p784_p13 = pnand %p1330_p12, %p1084_p6 }
 0x270   : > { %p785_p0 = pneg %p784_p13 }
 0x272   : > { %989 = dma.done.wait (%p785_p0), %s619_s23, 512  }
 0x273   : > { %991 = vsyncadd (%p785_p0), %s619_s23, 4294966784  ;;  %s1331_s18 = sld [smem:[#allocation13_spill]]  ;;  %p22_p3 = scmp.ge.s32.totalorder %s1102_s11, 4  }
 0x274   : > { %s1332_s23 = sld [smem:[#allocation14_spill]]  ;;  %s1333_s21 = smov %s998_s22 }
 0x275   : > { %s1335_s24 = smov %s1102_s11  ;;  %24 = sbr.rel (!%p22_p3) target bundleno = 10 (0xa), region = 106 }
 0x279   : > { %s1334_s22 = smov %s1331_s18 }
 0x27a   :  { %625 = vsyncpa [#allocation3], 1 }
 0x27b   :  { %627 = vsyncpa [#allocation3 + $0x1], 1 }
 0x27c   :  { %628 = vsyncpa [#allocation6], 1 }
 0x27d   :  { %630 = vsyncpa [#allocation6 + $0x1], 1 }
 0x27e   :  { %631 = vsyncpa [#allocation4], 1 }
 0x27f   :  { %633 = vsyncpa [#allocation4 + $0x1], 1 }

</bundles_post_ra>
